<compile_context>
chip_gen: v5e
topology: v5e:2x2
jax: 0.10.0
libtpu: 0.0.40
codegen_flags: <defaults>
</compile_context>

<pallas_src>
import numpy as np
import jax
import jax.numpy as jnp
from jax.experimental import pallas as pl
from jax.experimental.pallas import tpu as pltpu


# ----------------------------------------------------------------------------
# Buffer construction (mirrors the PyTorch module's __init__ exactly)
# ----------------------------------------------------------------------------
def get_1d_sincos_pos_embed_from_grid(embed_dim: int, pos: np.ndarray) -> np.ndarray:
    assert embed_dim % 2 == 0
    omega = np.arange(embed_dim // 2, dtype=np.float64)
    omega /= embed_dim / 2.0
    omega = 1.0 / 10000 ** omega
    pos = pos.reshape(-1)
    out = np.einsum("m,d->md", pos, omega)
    emb_sin = np.sin(out)
    emb_cos = np.cos(out)
    return np.concatenate([emb_sin, emb_cos], axis=1)


def get_nd_sincos_pos_embed(embed_dim: int, shape) -> np.ndarray:
    assert embed_dim % (2 * len(shape)) == 0
    grid = np.meshgrid(*[np.arange(s, dtype=np.float32) for s in shape])
    grid = np.stack(grid, axis=0)
    return np.concatenate(
        [
            get_1d_sincos_pos_embed_from_grid(embed_dim // len(shape), grid[i])
            for i in range(len(shape))
        ],
        axis=1,
    )


# ----------------------------------------------------------------------------
# Pallas kernel: out = x + pos_emb  (pos_emb broadcast over batch)
# ----------------------------------------------------------------------------
def _add_pos_emb_kernel(x_ref, pe_ref, o_ref):
    # x_ref : (Bblk, TILE_S, D) tile of activations
    # pe_ref: (1,    TILE_S, D) tile of the shared positional table
    # o_ref : (Bblk, TILE_S, D) output tile
    # jnp broadcasting handles the (1 -> Bblk) batch broadcast on the VPU.
    o_ref[...] = (x_ref[...] + pe_ref[...]).astype(o_ref.dtype)


def _round_up(n: int, m: int) -> int:
    return -(-n // m) * m


def sinusoidal_pos_emb_forward(
    x: jax.Array,
    pos_emb: jax.Array,
    *,
    tile_s: int | None = None,
    batch_in_block: bool | None = None,
    slab_bytes: int = 2 << 20,              # ~2 MiB per in-flight x slab
    vmem_limit_bytes: int = 32 * 1024 * 1024,
    donate_x: bool = False,
) -> jax.Array:
    """x: (B, S, D); pos_emb: (1, max_tokens, D). Returns x + pos_emb[:, :S]."""
    B, S, D = x.shape
    pe_lead, max_tokens, d_pe = pos_emb.shape
    if pe_lead != 1 or d_pe != D:
        raise ValueError(f"pos_emb shape {pos_emb.shape} incompatible with x {x.shape}")
    if S > max_tokens:
        raise ValueError(
            f"sequence length {S} exceeds positional table size {max_tokens}"
        )

    # Match torch type-promotion semantics (bf16 x + f32 table -> f32 output).
    out_dtype = jnp.result_type(x.dtype, pos_emb.dtype)

    itemsize = max(
        jnp.dtype(x.dtype).itemsize,
        jnp.dtype(pos_emb.dtype).itemsize,
        jnp.dtype(out_dtype).itemsize,
    )
    row_bytes = D * itemsize
    s_cap = _round_up(S, 8)  # never need a tile taller than the (8-padded) seq

    if batch_in_block is None:
        # Prefer one block that spans the whole batch when at least 8 sequence
        # rows per batch element still fit the slab budget.
        batch_in_block = (slab_bytes // max(1, B * row_bytes)) >= 8

    if batch_in_block:
        if tile_s is None:
            tile_s = max(8, ((slab_bytes // (B * row_bytes)) // 8) * 8)
            tile_s = min(tile_s, s_cap)
        assert tile_s % 8 == 0, "TILE_S must be a multiple of 8 (sublane rule)"
        grid = (pl.cdiv(S, tile_s),)
        in_specs = [
            # Activations: all B batch elements for this sequence tile.
            pl.BlockSpec((B, tile_s, D), lambda s: (0, s, 0)),
            # Positional table: fetched once per sequence tile, broadcast in-kernel.
            pl.BlockSpec((1, tile_s, D), lambda s: (0, s, 0)),
        ]
        out_specs = pl.BlockSpec((B, tile_s, D), lambda s: (0, s, 0))
        dim_sem = ("parallel",)
    else:
        if tile_s is None:
            tile_s = max(8, ((slab_bytes // row_bytes) // 8) * 8)
            tile_s = min(tile_s, s_cap)
        assert tile_s % 8 == 0, "TILE_S must be a multiple of 8 (sublane rule)"
        # Batch innermost; pe block index is b-independent, so the pe tile stays
        # resident in VMEM across the batch loop (pe HBM traffic is S*D, not B*S*D).
        grid = (pl.cdiv(S, tile_s), B)
        in_specs = [
            pl.BlockSpec((1, tile_s, D), lambda s, b: (b, s, 0)),
            pl.BlockSpec((1, tile_s, D), lambda s, b: (0, s, 0)),
        ]
        out_specs = pl.BlockSpec((1, tile_s, D), lambda s, b: (b, s, 0))
        dim_sem = ("parallel", "parallel")

    return pl.pallas_call(
        _add_pos_emb_kernel,
        out_shape=jax.ShapeDtypeStruct((B, S, D), out_dtype),
        grid_spec=pltpu.PrefetchScalarGridSpec(
            num_scalar_prefetch=0,
            grid=grid,
            in_specs=in_specs,
            out_specs=out_specs,
        ),
        compiler_params=pltpu.CompilerParams(
            dimension_semantics=dim_sem,   # megacore split on v7x
            vmem_limit_bytes=vmem_limit_bytes,
        ),
        input_output_aliases=(
            {0: 0} if (donate_x and jnp.dtype(x.dtype) == jnp.dtype(out_dtype)) else {}
        ),
    )(x, pos_emb)


# ----------------------------------------------------------------------------
# Module-like wrapper
# ----------------------------------------------------------------------------
class SinusoidalPositionalEmbeddingPallas:
    def __init__(self, embed_dim: int, shape, learnable: bool = False,
                 param_dtype=jnp.float32):
        if learnable:
            max_tokens = int(np.prod(shape))
            # TODO(synk): torch uses .normal_(std=0.02); jax PRNG init is
            # equivalent in distribution but not bit-identical.
            key = jax.random.PRNGKey(42)
            self.pos_emb = (
                0.02 * jax.random.normal(key, (1, max_tokens, embed_dim))
            ).astype(param_dtype)
        else:
            self.pos_emb = jnp.asarray(
                get_nd_sincos_pos_embed(embed_dim, shape), dtype=param_dtype
            )[None]  # (1, max_tokens, embed_dim)

    def __call__(self, x: jax.Array, **kwargs) -> jax.Array:
        return sinusoidal_pos_emb_forward(x, self.pos_emb, **kwargs)


# ----------------------------------------------------------------------------
if __name__ == "__main__":
    embed_dim = 128              # lane-dense (multiple of 128)
    grid_shape = (4, 4)          # -> max_tokens = 16
    module = SinusoidalPositionalEmbeddingPallas(embed_dim, grid_shape, learnable=False)

    root = jax.random.PRNGKey(0)
    k1, k2, k3, k4 = jax.random.split(root, 4)

    # --- Test 1: default (batch-in-block) path, S < max_tokens ---
    B, S = 2, 8
    x = jax.random.normal(k1, (B, S, embed_dim), dtype=jnp.float32)
    out = jax.block_until_ready(module(x))
    ref = x + module.pos_emb[:, :S]
    np.testing.assert_allclose(np.asarray(out), np.asarray(ref), rtol=1e-6, atol=1e-6)
    assert out.shape == (B, S, embed_dim) and out.dtype == jnp.float32

    # --- Test 2: fallback per-batch-element path, explicit small tile, S == max_tokens ---
    S2 = 16
    x2 = jax.random.normal(k2, (B, S2, embed_dim), dtype=jnp.float32)
    out2 = jax.block_until_ready(module(x2, tile_s=8, batch_in_block=False))
    ref2 = x2 + module.pos_emb[:, :S2]
    np.testing.assert_allclose(np.asarray(out2), np.asarray(ref2), rtol=1e-6, atol=1e-6)

    # --- Test 3: S not a multiple of TILE_S (partial last tile), batched path ---
    S3 = 12
    x3 = jax.random.normal(k3, (B, S3, embed_dim), dtype=jnp.float32)
    out3 = jax.block_until_ready(module(x3, tile_s=8, batch_in_block=True))
    ref3 = x3 + module.pos_emb[:, :S3]
    np.testing.assert_allclose(np.asarray(out3), np.asarray(ref3), rtol=1e-6, atol=1e-6)

    # --- Test 4: bf16 activations + f32 table (promotes to f32, like torch) ---
    x4 = jax.random.normal(k4, (B, S, embed_dim)).astype(jnp.bfloat16)
    out4 = jax.block_until_ready(module(x4))
    ref4 = x4 + module.pos_emb[:, :S]
    assert out4.dtype == jnp.float32
    np.testing.assert_allclose(np.asarray(out4), np.asarray(ref4), rtol=1e-2, atol=1e-2)

    print("KERNEL_OK")
</pallas_src>

<mosaic_0001>
module attributes {stable_mosaic.version = 11 : i64} {
  func.func @_add_pos_emb_kernel(%arg0: i32, %arg1: memref<2x8x128xf32, #tpu.memory_space<vmem>>, %arg2: memref<1x8x128xf32, #tpu.memory_space<vmem>>, %arg3: memref<2x8x128xf32, #tpu.memory_space<vmem>>) attributes {dimension_semantics = [#tpu.dimension_semantics<parallel>], iteration_bounds = array<i64: 1>, scalar_prefetch = 0 : i64, scratch_operands = 0 : i64, tpu.core_type = #tpu.core_type<tc>, window_params = [{transform_indices = @transform_0, window_bounds = array<i64: 2, 8, 128>}, {transform_indices = @transform_1, window_bounds = array<i64: 1, 8, 128>}, {transform_indices = @transform_2, window_bounds = array<i64: 2, 8, 128>}]} {
    %c0 = arith.constant 0 : index
    %c0_0 = arith.constant 0 : index
    %c0_1 = arith.constant 0 : index
    %0 = vector.load %arg1[%c0, %c0_0, %c0_1] : memref<2x8x128xf32, #tpu.memory_space<vmem>>, vector<2x8x128xf32>
    %c0_2 = arith.constant 0 : index
    %c0_3 = arith.constant 0 : index
    %c0_4 = arith.constant 0 : index
    %1 = vector.load %arg2[%c0_2, %c0_3, %c0_4] : memref<1x8x128xf32, #tpu.memory_space<vmem>>, vector<1x8x128xf32>
    %2 = vector.broadcast %1 : vector<1x8x128xf32> to vector<2x8x128xf32>
    %3 = arith.addf %0, %2 : vector<2x8x128xf32>
    %c0_5 = arith.constant 0 : index
    %c0_6 = arith.constant 0 : index
    %c0_7 = arith.constant 0 : index
    %4 = vector.load %arg3[%c0_5, %c0_6, %c0_7] : memref<2x8x128xf32, #tpu.memory_space<vmem>>, vector<2x8x128xf32>
    tpu.vector_store %arg3[%c0_5, %c0_6, %c0_7], %3 {strides = array<i32>} : memref<2x8x128xf32, #tpu.memory_space<vmem>>, vector<2x8x128xf32>,
    return
  }
  func.func @transform_0(%arg0: i32) -> (i32, i32, i32) {
    %c0_i32 = arith.constant 0 : i32
    %c0_i32_0 = arith.constant 0 : i32
    %c0_i32_1 = arith.constant 0 : i32
    return %c0_i32, %arg0, %c0_i32_0 : i32, i32, i32
  }
  func.func @transform_1(%arg0: i32) -> (i32, i32, i32) {
    %c0_i32 = arith.constant 0 : i32
    %c0_i32_0 = arith.constant 0 : i32
    %c0_i32_1 = arith.constant 0 : i32
    return %c0_i32, %arg0, %c0_i32_0 : i32, i32, i32
  }
  func.func @transform_2(%arg0: i32) -> (i32, i32, i32) {
    %c0_i32 = arith.constant 0 : i32
    %c0_i32_0 = arith.constant 0 : i32
    %c0_i32_1 = arith.constant 0 : i32
    return %c0_i32, %arg0, %c0_i32_0 : i32, i32, i32
  }
}

</mosaic_0001>

<bundles_post_ra>
// kernel: tpu_custom_call.1
= control target key start
LH: loop header
LB: loop body
LE: loop exit
PB: predicated region body
PF: predicated region fallthrough
CT: control target
= control target key end

     0   :  { %7 = vsyncpa [#allocation3], 0  ;;  %s181_s0 = inlined_call_operand.hbm [shape: f32[2,8,128], index: 0, kind: input, shape index: {}]   ;;  %s182_s1 = inlined_call_operand.hbm [shape: f32[1,16,128], index: 1, kind: input, shape index: {}]   ;;  %s183_s2 = inlined_call_operand.hbm [shape: f32[2,8,128], index: 2, kind: output, shape index: {}]  }
   0x1   :  { %8 = vsyncpa [#allocation6], 0 }
   0x2   :  { %9 = vsyncpa [#allocation4], 0  ;;  %s14_s11 = sshll.u32 %s181_s0, 4  ;;  %s152_s12 = smov [#allocation2]   ;;  %s15_s11 = int_to_ptr.hbm [resolvable:$true] %s14_s11 }
   0x3   :  { %s16_s13 = sshll.u32 %s152_s12, 4  ;;  %s28_s16 = sshll.u32 %s182_s1, 4  ;;  %s17_s13 = int_to_ptr.vmem [resolvable:$true] %s16_s13  ;;  %s29_s16 = int_to_ptr.hbm [resolvable:$true] %s28_s16 }
   0x4   :  { %s153_s17 = smov 128   ;;  %s154_s18 = smov 8  }
   0x5   :  { %22 = dma.hbm_to_vmem [thread:$0]  %s15_s11, 256, %s17_s13, [#allocation3], %s153_s17, %s153_s17, %s154_s18  }
   0x6   :  { %s155_s19 = smov [#allocation5]  }
   0x7   :  { %s30_s20 = sshll.u32 %s155_s19, 4  ;;  %s31_s20 = int_to_ptr.vmem [resolvable:$true] %s30_s20 }
   0x8   :  { %33 = dma.hbm_to_vmem [thread:$0]  %s29_s16, 128, %s31_s20, [#allocation6]  }
   0x9   :  { %146 = dma.done.wait [#allocation3], 256  }
   0xa   :  { %147 = vsyncadd [#allocation3], 4294967040 }
   0xb   :  { %148 = dma.done.wait [#allocation6], 128  }
   0xc   :  { %149 = vsyncadd [#allocation6], 4294967168  ;;  %s156_s0 = smov [#allocation7]   ;;  %s55_s24 = sshll.u32 %s183_s2, 4  ;;  %v42_v0 = vld [vmem:[#allocation2] sm:$0xff]  ;;  %v44_v1 = vld [vmem:[#allocation5] sm:$0xff]  ;;  %s56_s24 = int_to_ptr.hbm [resolvable:$true] %s55_s24 }
   0xd   :  { %s53_s21 = sshll.u32 %s156_s0, 4  ;;  %v43_v2 = vld [vmem:[#allocation2 + $0x8] sm:$0xff]  ;;  %v45_v3 = vadd.f32 %v44_v1, %v42_v0  ;;  %s54_s21 = int_to_ptr.vmem [resolvable:$true] %s53_s21 }
   0xe   :  { %v46_v4 = vadd.f32 %v44_v1, %v43_v2 }
   0xf   :  { %47 = vst [vmem:[#allocation7] sm:$0xff] %v45_v3 }
  0x10   :  { %48 = vst [vmem:[#allocation7 + $0x8] sm:$0xff] %v46_v4 }
  0x11   :  { %61 = dma.vmem_to_hbm [thread:$0]  %s54_s21, 256, %s56_s24, [#allocation4], %s153_s17, %s153_s17, %s154_s18  }
  0x12   :  { %150 = dma.done.wait [#allocation4], 256  }
  0x13   :  { %151 = vsyncadd [#allocation4], 4294967040 }
  0x14   :  { %66 = vsyncpa [#allocation3], 1 }
  0x15   :  { %67 = vsyncpa [#allocation6], 1 }
  0x16   :  { %68 = vsyncpa [#allocation4], 1 }

</bundles_post_ra>
